<compile_context>
chip_gen: v7x
topology: tpu7x:2x2x1
jax: 0.10.0
libtpu: 0.0.40
codegen_flags: <defaults>
</compile_context>

<pallas_src>
import jax
import jax.numpy as jnp
from jax.experimental import pallas as pl
from jax.experimental.pallas import tpu as pltpu

KH = KW = 3
STRIDE = 2


def _downsample_matmul_kernel(k_ref, w_ref, b_ref, o_ref):
    """One MXU matmul: (Cout_pad, K) x (K, TM) + bias -> (Cout_pad, TM).

    k_ref: (9*Cin, TM)       im2col contraction tile, M (= N*Ho*Wo) on lanes.
    w_ref: (Cout_pad, 9*Cin) weight, K ordered (kh, kw, cin), Cout padded to 8.
    b_ref: (Cout_pad, 1)     bias (lane-broadcast add).
    o_ref: (Cout_pad, TM)    lane-dense output tile (full aligned vregs).
    """
    acc = jnp.dot(w_ref[...], k_ref[...],
                  preferred_element_type=jnp.float32)     # (Cout_pad, TM)
    acc = acc + b_ref[...].astype(jnp.float32)
    o_ref[...] = acc.astype(o_ref.dtype)


def downsample_pallas(x_nchw, weight_oihw, bias):
    """Conv2d(channel, channel, k=3, stride=2, padding=1) forward.

    x_nchw:      (N, C, H, W)  PyTorch-layout input
    weight_oihw: (C, C, 3, 3)  PyTorch Conv2d weight layout
    bias:        (C,)
    returns:     (N, C, Ho, Wo) PyTorch layout
    """
    N, C, H, W = x_nchw.shape
    Cout = weight_oihw.shape[0]
    Ho = (H + 2 - KH) // STRIDE + 1
    Wo = (W + 2 - KW) // STRIDE + 1
    M = N * Ho * Wo
    K = KH * KW * C
    Cout_pad = -(-Cout // 8) * 8                              # sublane-align output

    # ---- wrapper-side layout / im2col (pure XLA, fuses into one copy fusion)
    # channels-first so cin lands on sublanes and M = N*Ho*Wo lands on lanes.
    x_cn = jnp.transpose(x_nchw, (1, 0, 2, 3))                # (C, N, H, W)
    x_pad = jnp.pad(x_cn, ((0, 0), (0, 0), (1, 1), (1, 1)))   # (C, N, H+2, W+2)

    # im2col: tap (kh, kw) of the stride-2 conv is a strided window of x_pad.
    # K order is (kh, kw, cin) to match the weight reshape below.
    taps = []
    for kh in range(KH):
        for kw in range(KW):
            tap = x_pad[:, :, kh:kh + 2 * Ho:2, kw:kw + 2 * Wo:2]  # (C, N, Ho, Wo)
            taps.append(tap.reshape(C, M))
    k_mat = jnp.concatenate(taps, axis=0)                     # (9*C, M)

    # Weight (O, I, KH, KW) -> (O, KH, KW, I) -> (O, 9*I); pad Cout rows to 8.
    w_r = jnp.transpose(weight_oihw, (0, 2, 3, 1)).reshape(Cout, K)
    w_p = jnp.pad(w_r, ((0, Cout_pad - Cout), (0, 0)))        # (Cout_pad, K)
    b_p = jnp.pad(bias.reshape(Cout, 1), ((0, Cout_pad - Cout), (0, 0)))

    # ---- M tiling: largest 128-multiple tile that divides M (toy: TM = M = 128)
    TM = M
    for cand in (1024, 512, 256, 128):
        if M % cand == 0:
            TM = cand
            break
    grid = (M // TM,)

    out_flat = pl.pallas_call(
        _downsample_matmul_kernel,
        out_shape=jax.ShapeDtypeStruct((Cout_pad, M), x_nchw.dtype),
        grid=grid,
        in_specs=[
            pl.BlockSpec((K, TM), lambda i: (0, i)),          # im2col tile
            pl.BlockSpec((Cout_pad, K), lambda i: (0, 0)),    # weight (resident)
            pl.BlockSpec((Cout_pad, 1), lambda i: (0, 0)),    # bias   (resident)
        ],
        out_specs=pl.BlockSpec((Cout_pad, TM), lambda i: (0, i)),
        compiler_params=pltpu.CompilerParams(
            dimension_semantics=("parallel",)),
    )(k_mat, w_p, b_p)

    # (Cout_pad, N*Ho*Wo) -> drop padded rows -> (N, Cout, Ho, Wo)
    out = out_flat[:Cout].reshape(Cout, N, Ho, Wo)
    return jnp.transpose(out, (1, 0, 2, 3))


def downsample_reference(x_nchw, weight_oihw, bias):
    """Pure-JAX reference (lax conv) for verification."""
    x_nhwc = jnp.transpose(x_nchw, (0, 2, 3, 1))
    w_hwio = jnp.transpose(weight_oihw, (2, 3, 1, 0))
    out = jax.lax.conv_general_dilated(
        x_nhwc, w_hwio,
        window_strides=(STRIDE, STRIDE),
        padding=((1, 1), (1, 1)),
        dimension_numbers=("NHWC", "HWIO", "NHWC"),
    ) + bias[None, None, None, :]
    return jnp.transpose(out, (0, 3, 1, 2))


if __name__ == "__main__":
    # Small shapes consistent with the module: batch=2, channel=4, spatial=16.
    N, C, H, W = 2, 4, 16, 16

    key = jax.random.PRNGKey(0)
    kx, kw_key, kb_key = jax.random.split(key, 3)

    x = jax.random.normal(kx, (N, C, H, W), dtype=jnp.float32)
    # Deterministic synthetic parameters (shapes from nn.Conv2d(C, C, 3)).
    fan_in = C * KH * KW
    bound = 1.0 / (fan_in ** 0.5)
    weight = jax.random.uniform(kw_key, (C, C, KH, KW), jnp.float32, -bound, bound)
    bias = jax.random.uniform(kb_key, (C,), jnp.float32, -bound, bound)

    out = downsample_pallas(x, weight, bias)
    out = jax.block_until_ready(out)

    ref = downsample_reference(x, weight, bias)
    assert out.shape == (N, C, H // 2, W // 2), out.shape
    assert jnp.allclose(out, ref, atol=1e-5, rtol=1e-5), "mismatch vs reference"

    print("KERNEL_OK")
</pallas_src>

<mosaic_0001>
module attributes {stable_mosaic.version = 11 : i64} {
  func.func @_downsample_matmul_kernel(%arg0: i32, %arg1: memref<36x128xf32, #tpu.memory_space<vmem>>, %arg2: memref<8x36xf32, #tpu.memory_space<vmem>>, %arg3: memref<8x1xf32, #tpu.memory_space<vmem>>, %arg4: memref<8x128xf32, #tpu.memory_space<vmem>>) attributes {dimension_semantics = [#tpu.dimension_semantics<parallel>], iteration_bounds = array<i64: 1>, scalar_prefetch = 0 : i64, scratch_operands = 0 : i64, tpu.core_type = #tpu.core_type<tc>, window_params = [{transform_indices = @transform_0, window_bounds = array<i64: 36, 128>}, {pipeline_mode = #tpu.pipeline_mode<synchronous>, transform_indices = @transform_1, window_bounds = array<i64: 8, 36>}, {pipeline_mode = #tpu.pipeline_mode<synchronous>, transform_indices = @transform_2, window_bounds = array<i64: 8, 1>}, {transform_indices = @transform_3, window_bounds = array<i64: 8, 128>}]} {
    %c0 = arith.constant 0 : index
    %c0_0 = arith.constant 0 : index
    %0 = vector.load %arg2[%c0, %c0_0] : memref<8x36xf32, #tpu.memory_space<vmem>>, vector<8x36xf32>
    %c0_1 = arith.constant 0 : index
    %c0_2 = arith.constant 0 : index
    %1 = vector.load %arg1[%c0_1, %c0_2] : memref<36x128xf32, #tpu.memory_space<vmem>>, vector<36x128xf32>
    %cst = arith.constant dense<0.000000e+00> : vector<8x128xf32>
    %2 = tpu.matmul %0, %1, %cst {dimension_numbers = #tpu.dot_dimension_numbers<[1], [0], [0], [1], [0, 0, 1, 1], [], []>} : vector<8x36xf32>, vector<36x128xf32>, vector<8x128xf32> -> vector<8x128xf32>
    %c0_3 = arith.constant 0 : index
    %c0_4 = arith.constant 0 : index
    %3 = vector.load %arg3[%c0_3, %c0_4] : memref<8x1xf32, #tpu.memory_space<vmem>>, vector<8x1xf32>
    %4 = vector.broadcast %3 : vector<8x1xf32> to vector<8x128xf32>
    %5 = arith.addf %2, %4 : vector<8x128xf32>
    %c0_5 = arith.constant 0 : index
    %c0_6 = arith.constant 0 : index
    %6 = vector.load %arg4[%c0_5, %c0_6] : memref<8x128xf32, #tpu.memory_space<vmem>>, vector<8x128xf32>
    tpu.vector_store %arg4[%c0_5, %c0_6], %5 {strides = array<i32>} : memref<8x128xf32, #tpu.memory_space<vmem>>, vector<8x128xf32>,
    return
  }
  func.func @transform_0(%arg0: i32) -> (i32, i32) {
    %c0_i32 = arith.constant 0 : i32
    %c0_i32_0 = arith.constant 0 : i32
    return %c0_i32, %arg0 : i32, i32
  }
  func.func @transform_1(%arg0: i32) -> (i32, i32) {
    %c0_i32 = arith.constant 0 : i32
    %c0_i32_0 = arith.constant 0 : i32
    %c0_i32_1 = arith.constant 0 : i32
    return %c0_i32, %c0_i32_0 : i32, i32
  }
  func.func @transform_2(%arg0: i32) -> (i32, i32) {
    %c0_i32 = arith.constant 0 : i32
    %c0_i32_0 = arith.constant 0 : i32
    %c0_i32_1 = arith.constant 0 : i32
    return %c0_i32, %c0_i32_0 : i32, i32
  }
  func.func @transform_3(%arg0: i32) -> (i32, i32) {
    %c0_i32 = arith.constant 0 : i32
    %c0_i32_0 = arith.constant 0 : i32
    return %c0_i32, %arg0 : i32, i32
  }
}

</mosaic_0001>

<bundles_post_ra>
// kernel: tpu_custom_call.1
= control target key start
LH: loop header
LB: loop body
LE: loop exit
PB: predicated region body
PF: predicated region fallthrough
CT: control target
= control target key end

     0   :  { %8 = vsyncpa [#allocation3], 0  ;;  %s277_s0 = inlined_call_operand.hbm [shape: f32[36,128], index: 0, kind: input, shape index: {}]   ;;  %s278_s1 = inlined_call_operand.vmem [shape: f32[8,36], index: 1, kind: input, shape index: {}]   ;;  %s279_s2 = inlined_call_operand.vmem [shape: f32[8,1], index: 2, kind: input, shape index: {}]   ;;  %s280_s3 = inlined_call_operand.hbm [shape: f32[8,128], index: 3, kind: output, shape index: {}]  }
   0x1   :  { %9 = vsyncpa [#allocation4], 0  ;;  %s219_s12 = smov [#allocation2]   ;;  %s171_s16 = scalar_lea.hbm %s277_s0, 640 }
   0x2   :  { %s15_s13 = sshll.u32 %s219_s12, 4  ;;  %p172_p0 = scmp.ne.s32.totalorder %s277_s0, %s171_s16  ;;  %s16_s13 = int_to_ptr.vmem [resolvable:$true] %s15_s13 }
   0x3   :  { %p175_p1 = scmp.lt.u32.totalorder %s171_s16, %s277_s0 }
   0x5   :  { %p177_p2 = pnand %p175_p1, %p172_p0 }
   0x7   :  { %180 = shalt.err (!%p177_p2)
}
   0x8   :  { %s181_s21 = scalar_lea.vmem %s16_s13, 640  ;;  %p186_p4 = scmp.lt.s32.totalorder %s16_s13, %s16_s13 }
   0x9   :  { %p182_p3 = scmp.ne.s32.totalorder %s16_s13, %s181_s21  ;;  %p187_p5 = scmp.lt.s32.totalorder %s181_s21, %s181_s21 }
   0xb   :  { %p188_p6 = por %p187_p5, %p186_p4 }
   0xd   :  { %p189_p7 = pnand %p188_p6, %p182_p3 }
   0xf   :  { %192 = shalt.err (!%p189_p7)
}
  0x10   :  { %s220_s22 = smov 128   ;;  %s221_s23 = smov 8  }
  0x11   :  { %21 = dma.hbm_to_vmem [thread:$0]  %s277_s0, 640, %s16_s13, [#allocation3], %s220_s22, %s220_s22, %s221_s23  }
  0x12   :  { %215 = dma.done.wait [#allocation3], 640  }
  0x13   :  { %216 = vsyncadd [#allocation3], 4294966656  ;;  %v222_v0 = vmov 0.0|0.0   ;;  %vm223_vm0 = vmmov 0   ;;  %v224_v1 = vmov 0.0   ;;  %v225_v2 = vmov 0  }
  0x14   :  { %156 = vmatprep.subr.bf16.mxu0 %v222_v0  ;;  %153 = vmatprep.mubr.msk.f32.mxu0 %vm223_vm0, %v224_v1  ;;  %v30_v3 = vld [vmem:[#allocation2] sm:$0xff]  ;;  %v31_v4 = vld [vmem:[#allocation2 + $0x8] sm:$0xff]  ;;  %v32_v5 = vld [vmem:[#allocation2 + $0x10] sm:$0xff]  ;;  %vm45_vm1 = vcmask 1043456   ;;  %vm41_vm2 = vcmask 293888   ;;  %s226_s29 = smov [#allocation5]  }
  0x15   :  { %170 = vset.pattern.permute.xlu0 %v225_v2  ;;  %v157_v6 = vpack.c.bf16 %v31_v4, %v30_v3  ;;  %v33_v7 = vld [vmem:[#allocation2 + $0x18] sm:$0xff]  ;;  %v35_v8 = vld [vmem:[%s279_s2] sm:$0xff]  ;;  %s126_s30 = sshll.u32 %s226_s29, 4  ;;  %s127_s30 = int_to_ptr.vmem [resolvable:$true] %s126_s30 }
  0x16   :  { %v160_v9 = vpack.c.bf16 %v33_v7, %v32_v5  ;;  %38 = vperm.xlu0 %170, %v35_v8   ;;  %v34_v10 = vld [vmem:[#allocation2 + $0x20] sm:$0xf]  ;;  %s193_s2 = scalar_lea.vmem %s127_s30, 128  ;;  %p198_p9 = scmp.lt.s32.totalorder %s127_s30, %s127_s30 }
  0x17   :  { %158 = vmatpush3.bf16.msra.mxu0 %v157_v6  ;;  %v29_v11 = vld [vmem:[%s278_s1] sm:$0xff]  ;;  %p194_p8 = scmp.ne.s32.totalorder %s127_s30, %s193_s2  ;;  %p199_p10 = scmp.lt.s32.totalorder %s193_s2, %s193_s2 }
  0x18   :  { %159 = vmatprep.subr.bf16.mxu0 %v222_v0 }
  0x19   :  { %p200_p11 = por %p199_p10, %p198_p9 }
  0x1b   :  { %161 = vmatpush3.bf16.msra.mxu0 %v160_v9  ;;  %p201_p12 = pnand %p200_p11, %p194_p8 }
  0x1c   :  { %151 = vmatprep.subr.mxu0 %v224_v1 }
  0x1f   :  { %152 = vmatpush3.msk.msra.mxu0 %vm45_vm1, %v34_v10 }
  0x20   :  { %154 = vmatmul.mubr.msk.f32.vlgmr.msra.gmra.mrb[0].mxu0 %vm41_vm2, %v29_v11 }
  0x95   :  { %v39_v12 = vpop.permute.xlu0 %38 }
  0xf3   :  { %v115_v13 = vpop.f32.mrb[0].mxu0 }
  0xf4   :  { %v116_v14 = vadd.f32 %v115_v13, %v39_v12  ;;  %v155_v15 = vpop.f32.mrb[1].mxu0 }
  0xf6   :  { %119 = vst [vmem:[#allocation5] sm:$0xff] %v116_v14 }
  0xf7   :  { %204 = shalt.err (!%p201_p12)
}
  0xf8   :  { %s205_s5 = scalar_lea.hbm %s280_s3, 128 }
  0xf9   :  { %p206_p13 = scmp.ne.s32.totalorder %s280_s3, %s205_s5  ;;  %p209_p0 = scmp.lt.u32.totalorder %s205_s5, %s280_s3 }
  0xfb   :  { %p211_p1 = pnand %p209_p0, %p206_p13 }
  0xfd   :  { %214 = shalt.err (!%p211_p1)
}
  0xfe   :  { %129 = dma.vmem_to_hbm [thread:$0]  %s127_s30, 128, %s280_s3, [#allocation4]  }
  0xff   :  { %217 = dma.done.wait [#allocation4], 128  }
 0x100   :  { %218 = vsyncadd [#allocation4], 4294967168 }
 0x101   :  { %133 = vsyncpa [#allocation3], 1 }
 0x102   :  { %134 = vsyncpa [#allocation4], 1 }

</bundles_post_ra>
